<compile_context>
chip_gen: v6e
topology: v6e:2x2x1
jax: 0.10.0
libtpu: 0.0.40
codegen_flags: <defaults>
</compile_context>

<pallas_src>
import functools

import jax
import jax.numpy as jnp
from jax.experimental import pallas as pl
from jax.experimental.pallas import tpu as pltpu

_LANE = 128


def _round_up(n, m):
    return ((n + m - 1) // m) * m


def _sublane(dtype):
    # Sub-32-bit dtypes pack 2/4 rows per sublane; round batch tiles accordingly.
    itemsize = jnp.dtype(dtype).itemsize
    return 8 * max(1, 4 // max(1, itemsize))


def _vmem_budget_bytes():
    # Generation-aware cap: ~80% of physical VMEM (~102 MiB v5e/v6e, ~51 MiB/TC
    # v7x), floored at 32 MiB (v5e's scoped default is only 16 MiB).
    try:
        cap = pltpu.get_tpu_info().vmem_capacity_bytes
    except Exception:  # non-TPU / older runtimes: assume the smallest (v7x) VMEM
        cap = 64 << 20
    return max(32 << 20, int(cap * 0.8))


def _vmem_estimate(tm, dp, hp, cp, x_dtype, w_dtype, out_dtype):
    xi = jnp.dtype(x_dtype).itemsize
    wi = jnp.dtype(w_dtype).itemsize
    oi = jnp.dtype(out_dtype).itemsize
    return (
        (dp * hp + hp * cp + hp + cp) * wi  # resident weights/biases (Buffered(1))
        + 2 * tm * dp * xi                  # double-buffered x tiles
        + 2 * tm * cp * oi                  # double-buffered out tiles
        + tm * hp * 4                       # live f32 hidden activation
        + tm * cp * 4                       # f32 accumulator of the second dot
    )


def _choose_tm(batch, dp, hp, cp, x_dtype, w_dtype, out_dtype, budget, tm=None):
    sub = _sublane(x_dtype)
    b_cap = _round_up(batch, sub)
    if tm is not None:
        return max(sub, min(_round_up(tm, sub), b_cap))
    # Bigger tiles amortize per-grid-step overhead; pick the largest that fits.
    cands = sorted(
        {_round_up(c, sub) for c in (1024, 512, 256, 128, 64, 32, 16, 8)} | {b_cap},
        reverse=True,
    )
    for cand in cands:
        if cand > b_cap:
            continue
        if _vmem_estimate(cand, dp, hp, cp, x_dtype, w_dtype, out_dtype) + (4 << 20) <= budget:
            return cand
    return sub


def pad_params(w1, b1, w2, b2):
    """Zero-pad weights/biases to lane (128) multiples ONCE, outside the hot path."""
    d_in, h = w1.shape
    c = w2.shape[1]
    dp, hp, cp = _round_up(d_in, _LANE), _round_up(h, _LANE), _round_up(c, _LANE)

    def pad2(a, rows, cols):
        pr, pc = rows - a.shape[0], cols - a.shape[1]
        return a if (pr == 0 and pc == 0) else jnp.pad(a, ((0, pr), (0, pc)))

    return (
        pad2(w1, dp, hp),
        pad2(b1.reshape(1, -1), 1, hp),
        pad2(w2, hp, cp),
        pad2(b2.reshape(1, -1), 1, cp),
    )


def mlp_kernel(x_ref, w1_ref, b1_ref, w2_ref, b2_ref, o_ref):
    # x: (TM, Dp)  w1: (Dp, Hp)  b1: (1, Hp)  w2: (Hp, Cp)  b2: (1, Cp)  o: (TM, Cp)
    x = x_ref[...]
    h = jnp.dot(x, w1_ref[...], preferred_element_type=jnp.float32)
    h = h + b1_ref[...]
    h = jnp.maximum(h, 0.0)  # ReLU
    # Keep the second matmul on the fast (bf16) MXU path when weights are bf16;
    # accumulation stays f32 via preferred_element_type (no-op for f32 weights).
    h = h.astype(w2_ref.dtype)
    o = jnp.dot(h, w2_ref[...], preferred_element_type=jnp.float32)
    o = o + b2_ref[...]
    o_ref[...] = o.astype(o_ref.dtype)


@functools.partial(jax.jit, static_argnames=("num_classes", "tm", "vmem_limit"))
def _mlp_forward_padded(x, w1p, b1p, w2p, b2p, *, num_classes, tm, vmem_limit):
    batch, d_in = x.shape
    dp, hp = w1p.shape
    cp = w2p.shape[1]
    dtype = x.dtype

    bp = _round_up(batch, tm)
    # Pad x only when needed (skip the extra HBM pass for already-aligned shapes).
    if (bp, dp) != (batch, d_in):
        x = jnp.pad(x, ((0, bp - batch), (0, dp - d_in)))

    flops = 2 * bp * (dp * hp + hp * cp)
    bytes_accessed = (
        bp * dp * jnp.dtype(dtype).itemsize
        + w1p.size * w1p.dtype.itemsize + b1p.size * b1p.dtype.itemsize
        + w2p.size * w2p.dtype.itemsize + b2p.size * b2p.dtype.itemsize
        + bp * cp * jnp.dtype(dtype).itemsize
    )

    out = pl.pallas_call(
        mlp_kernel,
        out_shape=jax.ShapeDtypeStruct((bp, cp), dtype),
        grid_spec=pltpu.PrefetchScalarGridSpec(
            num_scalar_prefetch=0,
            grid=(bp // tm,),
            in_specs=[
                # x: tiled over batch, auto double-buffered by the pipeline.
                pl.BlockSpec((tm, dp), lambda i: (i, 0)),
                # Resident operands: constant block index + single buffer.
                pl.BlockSpec((dp, hp), lambda i: (0, 0), pipeline_mode=pl.Buffered(1)),
                pl.BlockSpec((1, hp), lambda i: (0, 0), pipeline_mode=pl.Buffered(1)),
                pl.BlockSpec((hp, cp), lambda i: (0, 0), pipeline_mode=pl.Buffered(1)),
                pl.BlockSpec((1, cp), lambda i: (0, 0), pipeline_mode=pl.Buffered(1)),
            ],
            out_specs=pl.BlockSpec((tm, cp), lambda i: (i, 0)),
        ),
        compiler_params=pltpu.CompilerParams(
            dimension_semantics=("parallel",),  # batch tiles shard across TCs (v7x)
            vmem_limit_bytes=vmem_limit,
        ),
        cost_estimate=pl.CostEstimate(
            flops=flops, transcendentals=0, bytes_accessed=bytes_accessed
        ),
    )(x, w1p, b1p, w2p, b2p)

    # Slice only when padding made it necessary (padded rows/cols are dropped).
    if bp != batch or cp != num_classes:
        out = out[:batch, :num_classes]
    return out


def simple_mlp_padded(x, w1p, b1p, w2p, b2p, *, num_classes, tm=None):
    """Forward pass with pre-padded (lane-aligned) parameters -- the hot path."""
    dp, hp = w1p.shape
    cp = w2p.shape[1]
    budget = _vmem_budget_bytes()
    chosen_tm = _choose_tm(x.shape[0], dp, hp, cp, x.dtype, w1p.dtype, x.dtype, budget, tm)
    est = _vmem_estimate(chosen_tm, dp, hp, cp, x.dtype, w1p.dtype, x.dtype)
    vmem_limit = int(min(max(est + (4 << 20), 32 << 20), budget))
    # TODO(synk): when est exceeds the VMEM budget (very large H), add a trailing
    # "arbitrary" grid axis over H that streams W1[:, h] / W2[h, :] tiles into an
    # f32 (TM, Cp) accumulator with bias+store in the pl.when finalize step.
    return _mlp_forward_padded(
        x, w1p, b1p, w2p, b2p, num_classes=num_classes, tm=chosen_tm, vmem_limit=vmem_limit
    )


def simple_mlp(x, w1, b1, w2, b2, *, tm=None):
    """Convenience wrapper: relu(x @ w1 + b1) @ w2 + b2 (pads params per call)."""
    w1p, b1p, w2p, b2p = pad_params(w1, b1, w2, b2)
    return simple_mlp_padded(x, w1p, b1p, w2p, b2p, num_classes=w2.shape[1], tm=tm)


def init_params(key, input_dim, hidden_dim, num_classes):
    """Deterministic init mirroring PyTorch nn.Linear's U(-1/sqrt(fan_in), ...)."""
    k1, k2, k3, k4 = jax.random.split(key, 4)
    lim1 = 1.0 / jnp.sqrt(input_dim)
    lim2 = 1.0 / jnp.sqrt(hidden_dim)
    # Stored as (in_features, out_features) = transpose of PyTorch weight layout.
    w1 = jax.random.uniform(k1, (input_dim, hidden_dim), jnp.float32, -lim1, lim1)
    b1 = jax.random.uniform(k2, (1, hidden_dim), jnp.float32, -lim1, lim1)
    w2 = jax.random.uniform(k3, (hidden_dim, num_classes), jnp.float32, -lim2, lim2)
    b2 = jax.random.uniform(k4, (1, num_classes), jnp.float32, -lim2, lim2)
    return w1, b1, w2, b2


if __name__ == "__main__":
    batch, input_dim, hidden_dim, num_classes = 8, 16, 32, 8

    key = jax.random.PRNGKey(0)
    kx, kp = jax.random.split(key)
    x = jax.random.normal(kx, (batch, input_dim), jnp.float32)
    w1, b1, w2, b2 = init_params(kp, input_dim, hidden_dim, num_classes)

    # Pad parameters ONCE at init (hoisted out of the per-call hot path).
    w1p, b1p, w2p, b2p = pad_params(w1, b1, w2, b2)

    out = simple_mlp_padded(x, w1p, b1p, w2p, b2p, num_classes=num_classes)
    out = jax.block_until_ready(out)

    # Reference check in plain JAX (same math as the PyTorch module).
    ref = jnp.maximum(x @ w1 + b1.reshape(1, -1), 0.0) @ w2 + b2.reshape(1, -1)
    assert out.shape == (batch, num_classes)
    assert jnp.allclose(out, ref, atol=1e-5, rtol=1e-5)

    print("KERNEL_OK")
</pallas_src>

<mosaic_0001>
module attributes {stable_mosaic.version = 11 : i64} {
  func.func @mlp_kernel(%arg0: i32, %arg1: memref<8x128xf32, #tpu.memory_space<vmem>>, %arg2: memref<128x128xf32, #tpu.memory_space<vmem>>, %arg3: memref<1x128xf32, #tpu.memory_space<vmem>>, %arg4: memref<128x128xf32, #tpu.memory_space<vmem>>, %arg5: memref<1x128xf32, #tpu.memory_space<vmem>>, %arg6: memref<8x128xf32, #tpu.memory_space<vmem>>) attributes {dimension_semantics = [#tpu.dimension_semantics<parallel>], iteration_bounds = array<i64: 1>, scalar_prefetch = 0 : i64, scratch_operands = 0 : i64, tpu.core_type = #tpu.core_type<tc>, window_params = [{transform_indices = @transform_0, window_bounds = array<i64: 8, 128>}, {pipeline_mode = #tpu.pipeline_mode<synchronous>, transform_indices = @transform_1, window_bounds = array<i64: 128, 128>}, {pipeline_mode = #tpu.pipeline_mode<synchronous>, transform_indices = @transform_2, window_bounds = array<i64: 1, 128>}, {pipeline_mode = #tpu.pipeline_mode<synchronous>, transform_indices = @transform_3, window_bounds = array<i64: 128, 128>}, {pipeline_mode = #tpu.pipeline_mode<synchronous>, transform_indices = @transform_4, window_bounds = array<i64: 1, 128>}, {transform_indices = @transform_5, window_bounds = array<i64: 8, 128>}]} {
    %c0 = arith.constant 0 : index
    %c0_0 = arith.constant 0 : index
    %0 = vector.load %arg1[%c0, %c0_0] : memref<8x128xf32, #tpu.memory_space<vmem>>, vector<8x128xf32>
    %c0_1 = arith.constant 0 : index
    %c0_2 = arith.constant 0 : index
    %1 = vector.load %arg2[%c0_1, %c0_2] : memref<128x128xf32, #tpu.memory_space<vmem>>, vector<128x128xf32>
    %cst = arith.constant dense<0.000000e+00> : vector<8x128xf32>
    %2 = tpu.matmul %0, %1, %cst {dimension_numbers = #tpu.dot_dimension_numbers<[1], [0], [0], [1], [0, 0, 1, 1], [], []>} : vector<8x128xf32>, vector<128x128xf32>, vector<8x128xf32> -> vector<8x128xf32>
    %c0_3 = arith.constant 0 : index
    %c0_4 = arith.constant 0 : index
    %3 = vector.load %arg3[%c0_3, %c0_4] : memref<1x128xf32, #tpu.memory_space<vmem>>, vector<1x128xf32>
    %4 = vector.broadcast %3 : vector<1x128xf32> to vector<8x128xf32>
    %5 = arith.addf %2, %4 : vector<8x128xf32>
    %cst_5 = arith.constant 0.000000e+00 : f32
    %6 = vector.broadcast %cst_5 : f32 to vector<8x128xf32>
    %7 = arith.maximumf %5, %6 : vector<8x128xf32>
    %c0_6 = arith.constant 0 : index
    %c0_7 = arith.constant 0 : index
    %8 = vector.load %arg4[%c0_6, %c0_7] : memref<128x128xf32, #tpu.memory_space<vmem>>, vector<128x128xf32>
    %cst_8 = arith.constant dense<0.000000e+00> : vector<8x128xf32>
    %9 = tpu.matmul %7, %8, %cst_8 {dimension_numbers = #tpu.dot_dimension_numbers<[1], [0], [0], [1], [0, 0, 1, 1], [], []>} : vector<8x128xf32>, vector<128x128xf32>, vector<8x128xf32> -> vector<8x128xf32>
    %c0_9 = arith.constant 0 : index
    %c0_10 = arith.constant 0 : index
    %10 = vector.load %arg5[%c0_9, %c0_10] : memref<1x128xf32, #tpu.memory_space<vmem>>, vector<1x128xf32>
    %11 = vector.broadcast %10 : vector<1x128xf32> to vector<8x128xf32>
    %12 = arith.addf %9, %11 : vector<8x128xf32>
    %c0_11 = arith.constant 0 : index
    %c0_12 = arith.constant 0 : index
    %13 = vector.load %arg6[%c0_11, %c0_12] : memref<8x128xf32, #tpu.memory_space<vmem>>, vector<8x128xf32>
    tpu.vector_store %arg6[%c0_11, %c0_12], %12 {strides = array<i32>} : memref<8x128xf32, #tpu.memory_space<vmem>>, vector<8x128xf32>,
    return
  }
  func.func @transform_0(%arg0: i32) -> (i32, i32) {
    %c0_i32 = arith.constant 0 : i32
    %c0_i32_0 = arith.constant 0 : i32
    return %arg0, %c0_i32 : i32, i32
  }
  func.func @transform_1(%arg0: i32) -> (i32, i32) {
    %c0_i32 = arith.constant 0 : i32
    %c0_i32_0 = arith.constant 0 : i32
    %c0_i32_1 = arith.constant 0 : i32
    return %c0_i32, %c0_i32_0 : i32, i32
  }
  func.func @transform_2(%arg0: i32) -> (i32, i32) {
    %c0_i32 = arith.constant 0 : i32
    %c0_i32_0 = arith.constant 0 : i32
    %c0_i32_1 = arith.constant 0 : i32
    return %c0_i32, %c0_i32_0 : i32, i32
  }
  func.func @transform_3(%arg0: i32) -> (i32, i32) {
    %c0_i32 = arith.constant 0 : i32
    %c0_i32_0 = arith.constant 0 : i32
    %c0_i32_1 = arith.constant 0 : i32
    return %c0_i32, %c0_i32_0 : i32, i32
  }
  func.func @transform_4(%arg0: i32) -> (i32, i32) {
    %c0_i32 = arith.constant 0 : i32
    %c0_i32_0 = arith.constant 0 : i32
    %c0_i32_1 = arith.constant 0 : i32
    return %c0_i32, %c0_i32_0 : i32, i32
  }
  func.func @transform_5(%arg0: i32) -> (i32, i32) {
    %c0_i32 = arith.constant 0 : i32
    %c0_i32_0 = arith.constant 0 : i32
    return %arg0, %c0_i32 : i32, i32
  }
}

</mosaic_0001>

<bundles_post_ra>
// kernel: _mlp_forward_padded.1
= control target key start
LH: loop header
LB: loop body
LE: loop exit
PB: predicated region body
PF: predicated region fallthrough
CT: control target
= control target key end

     0   :  { %10 = vsyncpa [#allocation3], 0  ;;  %s522_s0 = inlined_call_operand.vmem [shape: f32[8,128], index: 0, kind: input, shape index: {}]   ;;  %s523_s1 = inlined_call_operand.hbm [shape: f32[128,128], index: 1, kind: input, shape index: {}]   ;;  %s524_s2 = inlined_call_operand.vmem [shape: f32[1,128], index: 2, kind: input, shape index: {}]   ;;  %s525_s3 = inlined_call_operand.hbm [shape: f32[128,128], index: 3, kind: input, shape index: {}]   ;;  %s526_s4 = inlined_call_operand.vmem [shape: f32[1,128], index: 4, kind: input, shape index: {}]   ;;  %s527_s5 = inlined_call_operand.hbm [shape: f32[8,128], index: 5, kind: output, shape index: {}]  }
   0x1   :  { %11 = vsyncpa [#allocation6], 0 }
   0x2   :  { %12 = vsyncpa [#allocation4], 0  ;;  %s433_s18 = smov [#allocation2]  }
   0x3   :  { %s20_s19 = sshll.u32 %s433_s18, 4  ;;  %s21_s19 = int_to_ptr.vmem [resolvable:$true] %s20_s19 }
   0x4   :  { %s375_s20 = scalar_lea.vmem %s21_s19, 2048  ;;  %p380_p1 = scmp.lt.s32.totalorder %s21_s19, %s21_s19 }
   0x5   :  { %p376_p0 = scmp.ne.s32.totalorder %s21_s19, %s375_s20  ;;  %p381_p2 = scmp.lt.s32.totalorder %s375_s20, %s375_s20 }
   0x7   :  { %p382_p3 = por %p381_p2, %p380_p1 }
   0x9   :  { %p383_p4 = pnand %p382_p3, %p376_p0 }
   0xb   :  { %386 = shalt.err (!%p383_p4)
}
   0xc   :  { %s434_s21 = smov 128   ;;  %s435_s22 = smov 8  }
   0xd   :  { %26 = dma.hbm_to_vmem [thread:$0]  %s523_s1, 2048, %s21_s19, [#allocation3], %s434_s21, %s434_s21, %s435_s22  }
   0xe   :  { %s436_s25 = smov [#allocation5]  }
   0xf   :  { %s34_s26 = sshll.u32 %s436_s25, 4  ;;  %s35_s26 = int_to_ptr.vmem [resolvable:$true] %s34_s26 }
  0x10   :  { %s395_s27 = scalar_lea.vmem %s35_s26, 2048  ;;  %p400_p6 = scmp.lt.s32.totalorder %s35_s26, %s35_s26 }
  0x11   :  { %p396_p5 = scmp.ne.s32.totalorder %s35_s26, %s395_s27  ;;  %p401_p7 = scmp.lt.s32.totalorder %s395_s27, %s395_s27 }
  0x13   :  { %p402_p8 = por %p401_p7, %p400_p6 }
  0x15   :  { %p403_p9 = pnand %p402_p8, %p396_p5 }
  0x17   :  { %406 = shalt.err (!%p403_p9)
}
  0x18   :  { %40 = dma.hbm_to_vmem [thread:$0]  %s525_s3, 2048, %s35_s26, [#allocation6], %s434_s21, %s434_s21, %s435_s22  }
  0x19   :  { %427 = dma.done.wait [#allocation3], 2048  }
  0x1a   :  { %428 = vsyncadd [#allocation3], 4294965248 }
  0x1b   :  { %429 = dma.done.wait [#allocation6], 2048  }
  0x1c   :  { %430 = vsyncadd [#allocation6], 4294965248  ;;  %v437_v0 = vmov 0.0   ;;  %vm438_vm0 = vmmov 0   ;;  %v65_v1 = vld [vmem:[#allocation2 + $0x78] sm:$0xff]  ;;  %v64_v2 = vld [vmem:[#allocation2 + $0x70] sm:$0xff] }
  0x1d   :  { %290 = vmatprep.subr.mxu0 %v437_v0  ;;  %322 = vmatprep.mubr.msk.f32.mxu0 %vm438_vm0, %v437_v0  ;;  %v63_v3 = vld [vmem:[#allocation2 + $0x68] sm:$0xff]  ;;  %v62_v4 = vld [vmem:[#allocation2 + $0x60] sm:$0xff]  ;;  %v159_v5 = vld [vmem:[#allocation5 + $0x78] sm:$0xff]  ;;  %s439_s8 = smov [#allocation7]  }
  0x1e   :  { %325 = vmatprep.subr.mxu1 %v437_v0  ;;  %357 = vmatprep.mubr.msk.f32.mxu1 %vm438_vm0, %v437_v0  ;;  %v61_v6 = vld [vmem:[#allocation2 + $0x58] sm:$0xff]  ;;  %v158_v7 = vld [vmem:[#allocation5 + $0x70] sm:$0xff]  ;;  %v157_v8 = vld [vmem:[#allocation5 + $0x68] sm:$0xff]  ;;  %s244_s9 = sshll.u32 %s439_s8, 4  ;;  %s245_s9 = int_to_ptr.vmem [resolvable:$true] %s244_s9 }
  0x1f   :  { %291 = vmatpush3.msra.mxu0 %v65_v1  ;;  %326 = vmatpush3.msra.mxu1 %v159_v5  ;;  %v60_v9 = vld [vmem:[#allocation2 + $0x50] sm:$0xff]  ;;  %v156_v10 = vld [vmem:[#allocation5 + $0x60] sm:$0xff]  ;;  %v59_v11 = vld [vmem:[#allocation2 + $0x48] sm:$0xff]  ;;  %s407_s10 = scalar_lea.vmem %s245_s9, 128  ;;  %p412_p11 = scmp.lt.s32.totalorder %s245_s9, %s245_s9 }
  0x20   :  { %292 = vmatprep.subr.mxu0 %v437_v0  ;;  %327 = vmatprep.subr.mxu1 %v437_v0  ;;  %v155_v12 = vld [vmem:[#allocation5 + $0x58] sm:$0xff]  ;;  %v58_v13 = vld [vmem:[#allocation2 + $0x40] sm:$0xff]  ;;  %v154_v14 = vld [vmem:[#allocation5 + $0x50] sm:$0xff]  ;;  %p408_p10 = scmp.ne.s32.totalorder %s245_s9, %s407_s10  ;;  %p413_p12 = scmp.lt.s32.totalorder %s407_s10, %s407_s10 }
  0x21   :  { %293 = vmatpush3.msra.mxu0 %v64_v2  ;;  %328 = vmatpush3.msra.mxu1 %v158_v7  ;;  %v57_v15 = vld [vmem:[#allocation2 + $0x38] sm:$0xff]  ;;  %v153_v16 = vld [vmem:[#allocation5 + $0x48] sm:$0xff]  ;;  %v56_v17 = vld [vmem:[#allocation2 + $0x30] sm:$0xff] }
  0x22   :  { %294 = vmatprep.subr.mxu0 %v437_v0  ;;  %329 = vmatprep.subr.mxu1 %v437_v0  ;;  %v152_v18 = vld [vmem:[#allocation5 + $0x40] sm:$0xff]  ;;  %v55_v19 = vld [vmem:[#allocation2 + $0x28] sm:$0xff]  ;;  %v151_v20 = vld [vmem:[#allocation5 + $0x38] sm:$0xff]  ;;  %p414_p13 = por %p413_p12, %p412_p11 }
  0x23   :  { %295 = vmatpush3.msra.mxu0 %v63_v3  ;;  %330 = vmatpush3.msra.mxu1 %v157_v8  ;;  %v54_v21 = vld [vmem:[#allocation2 + $0x20] sm:$0xff]  ;;  %v150_v22 = vld [vmem:[#allocation5 + $0x30] sm:$0xff]  ;;  %v53_v23 = vld [vmem:[#allocation2 + $0x18] sm:$0xff] }
  0x24   :  { %296 = vmatprep.subr.mxu0 %v437_v0  ;;  %331 = vmatprep.subr.mxu1 %v437_v0  ;;  %v149_v24 = vld [vmem:[#allocation5 + $0x28] sm:$0xff]  ;;  %v52_v25 = vld [vmem:[#allocation2 + $0x10] sm:$0xff]  ;;  %v148_v26 = vld [vmem:[#allocation5 + $0x20] sm:$0xff]  ;;  %p415_p0 = pnand %p414_p13, %p408_p10 }
  0x25   :  { %297 = vmatpush3.msra.mxu0 %v62_v4  ;;  %332 = vmatpush3.msra.mxu1 %v156_v10  ;;  %v51_v27 = vld [vmem:[#allocation2 + $0x8] sm:$0xff]  ;;  %v147_v28 = vld [vmem:[#allocation5 + $0x18] sm:$0xff]  ;;  %v50_v29 = vld [vmem:[#allocation2] sm:$0xff] }
  0x26   :  { %298 = vmatprep.subr.mxu0 %v437_v0  ;;  %333 = vmatprep.subr.mxu1 %v437_v0  ;;  %v49_v30 = vld [vmem:[%s522_s0] sm:$0xff]  ;;  %v146_v31 = vld [vmem:[#allocation5 + $0x10] sm:$0xff]  ;;  %v145_v32 = vld [vmem:[#allocation5 + $0x8] sm:$0xff] }
  0x27   :  { %299 = vmatpush3.msra.mxu0 %v61_v6  ;;  %334 = vmatpush3.msra.mxu1 %v155_v12  ;;  %v144_v33 = vld [vmem:[#allocation5] sm:$0xff] }
  0x28   :  { %300 = vmatprep.subr.mxu0 %v437_v0  ;;  %335 = vmatprep.subr.mxu1 %v437_v0  ;;  %v254_v34 = vld [vmem:[%s524_s2] ss:$0 sm:$0xff] }
  0x29   :  { %301 = vmatpush3.msra.mxu0 %v60_v9  ;;  %336 = vmatpush3.msra.mxu1 %v154_v14  ;;  %v255_v39 = vld [vmem:[%s526_s4] ss:$0 sm:$0xff] }
  0x2a   :  { %302 = vmatprep.subr.mxu0 %v437_v0  ;;  %337 = vmatprep.subr.mxu1 %v437_v0 }
  0x2b   :  { %303 = vmatpush3.msra.mxu0 %v59_v11  ;;  %338 = vmatpush3.msra.mxu1 %v153_v16 }
  0x2c   :  { %304 = vmatprep.subr.mxu0 %v437_v0  ;;  %339 = vmatprep.subr.mxu1 %v437_v0 }
  0x2d   :  { %305 = vmatpush3.msra.mxu0 %v58_v13  ;;  %340 = vmatpush3.msra.mxu1 %v152_v18 }
  0x2e   :  { %306 = vmatprep.subr.mxu0 %v437_v0  ;;  %341 = vmatprep.subr.mxu1 %v437_v0 }
  0x2f   :  { %307 = vmatpush3.msra.mxu0 %v57_v15  ;;  %342 = vmatpush3.msra.mxu1 %v151_v20 }
  0x30   :  { %308 = vmatprep.subr.mxu0 %v437_v0  ;;  %343 = vmatprep.subr.mxu1 %v437_v0 }
  0x31   :  { %309 = vmatpush3.msra.mxu0 %v56_v17  ;;  %344 = vmatpush3.msra.mxu1 %v150_v22 }
  0x32   :  { %310 = vmatprep.subr.mxu0 %v437_v0  ;;  %345 = vmatprep.subr.mxu1 %v437_v0 }
  0x33   :  { %311 = vmatpush3.msra.mxu0 %v55_v19  ;;  %346 = vmatpush3.msra.mxu1 %v149_v24 }
  0x34   :  { %312 = vmatprep.subr.mxu0 %v437_v0  ;;  %347 = vmatprep.subr.mxu1 %v437_v0 }
  0x35   :  { %313 = vmatpush3.msra.mxu0 %v54_v21  ;;  %348 = vmatpush3.msra.mxu1 %v148_v26 }
  0x36   :  { %314 = vmatprep.subr.mxu0 %v437_v0  ;;  %349 = vmatprep.subr.mxu1 %v437_v0 }
  0x37   :  { %315 = vmatpush3.msra.mxu0 %v53_v23  ;;  %350 = vmatpush3.msra.mxu1 %v147_v28 }
  0x38   :  { %316 = vmatprep.subr.mxu0 %v437_v0  ;;  %351 = vmatprep.subr.mxu1 %v437_v0 }
  0x39   :  { %317 = vmatpush3.msra.mxu0 %v52_v25  ;;  %352 = vmatpush3.msra.mxu1 %v146_v31 }
  0x3a   :  { %318 = vmatprep.subr.mxu0 %v437_v0  ;;  %353 = vmatprep.subr.mxu1 %v437_v0 }
  0x3b   :  { %319 = vmatpush3.msra.mxu0 %v51_v27  ;;  %354 = vmatpush3.msra.mxu1 %v145_v32 }
  0x3c   :  { %320 = vmatprep.subr.mxu0 %v437_v0  ;;  %355 = vmatprep.subr.mxu1 %v437_v0 }
  0x3d   :  { %321 = vmatpush3.msra.mxu0 %v50_v29  ;;  %356 = vmatpush3.msra.mxu1 %v144_v33 }
  0x3e   :  { %323 = vmatmul.mubr.f32.vlgmr.msra.gmra.mxu0 %v49_v30 }
  0xfe   :  { %v139_v35 = vpop.f32.mrf.mxu0 }
  0xff   :  { %v140_v36 = vadd.f32 %v254_v34, %v139_v35 }
 0x100   :  { %v324_v37 = vpop.f32.mrf.mxu0 }
 0x101   :  { %v143_v38 = vmax.f32 %v140_v36, 0.0 }
 0x103   :  { %358 = vmatmul.mubr.f32.vlgmr.msra.gmra.mxu1 %v143_v38 }
 0x1c3   :  { %v233_v40 = vpop.f32.mrf.mxu1 }
 0x1c4   :  { %v234_v41 = vadd.f32 %v255_v39, %v233_v40 }
 0x1c5   :  { %v359_v42 = vpop.f32.mrf.mxu1 }
 0x1c6   :  { %237 = vst [vmem:[#allocation7] sm:$0xff] %v234_v41 }
 0x1c7   :  { %418 = shalt.err (!%p415_p0)
}
 0x1c8   :  { %247 = dma.vmem_to_hbm [thread:$0]  %s245_s9, 128, %s527_s5, [#allocation4]  }
 0x1c9   :  { %431 = dma.done.wait [#allocation4], 128  }
 0x1ca   :  { %432 = vsyncadd [#allocation4], 4294967168 }
 0x1cb   :  { %251 = vsyncpa [#allocation3], 1 }
 0x1cc   :  { %252 = vsyncpa [#allocation6], 1 }
 0x1cd   :  { %253 = vsyncpa [#allocation4], 1 }

</bundles_post_ra>
